<compile_context>
chip_gen: v5e
topology: v5e:2x2
jax: 0.10.0
libtpu: 0.0.40
codegen_flags: <defaults>
</compile_context>

<pallas_src>
import functools

import jax
import jax.numpy as jnp
from jax import lax
from jax.experimental import pallas as pl
from jax.experimental.pallas import tpu as pltpu


def lde_kernel(x_ref, dic_ref, wei_ref, dsq_ref, o_ref,
               m_sc, den_sc, acc_sc,
               *, t_true, needs_t_mask, flatten_out, mxu_dtype):
    # x_ref  : (bblk, tT, F)  current T-chunk of the input
    # dic_ref: (D, F)         dictionary (resident across grid steps)
    # wei_ref: (1, D)         per-entry scale
    # dsq_ref: (1, D)         precomputed ||dic||^2 (hoisted)
    # o_ref  : (bblk, D, F) or (bblk, D*F)  output block (written on last T step)
    # scratch: m_sc (bblk,D) running max, den_sc (bblk,D) running denom,
    #          acc_sc (bblk,D,F) running unnormalized e^T @ x
    bblk, t_tile, f = x_ref.shape
    d = dic_ref.shape[0]
    ti = pl.program_id(1)

    @pl.when(ti == 0)
    def _init():
        m_sc[...] = jnp.full_like(m_sc, -jnp.inf)
        den_sc[...] = jnp.zeros_like(den_sc)
        acc_sc[...] = jnp.zeros_like(acc_sc)

    x = x_ref[...].astype(jnp.float32)      # (bblk, tT, F)
    dic = dic_ref[...]                      # (D, F) f32
    wei = wei_ref[...]                      # (1, D)
    dsq = dsq_ref[...]                      # (1, D)

    # ---- squared distance via expansion ||x-d||^2 = ||x||^2 - 2 x.d + ||d||^2.
    # The x @ dic^T contraction stays f32: bf16 here would degrade small
    # distances (correctness review).  T is the row dim -> MXU matmul.
    x2d = x.reshape(bblk * t_tile, f)                                  # (bblk*tT, F)
    xd = lax.dot_general(x2d, dic, (((1,), (1,)), ((), ())),
                         preferred_element_type=jnp.float32)           # (bblk*tT, D) MXU
    xsq = jnp.sum(x2d * x2d, axis=-1, keepdims=True)                   # (bblk*tT, 1)
    d2 = jnp.maximum(xsq - 2.0 * xd + dsq, 0.0)                        # guard cancellation
    dist = jnp.sqrt(d2)                                                # (bblk*tT, D)

    # ---- attention logits (bias = 0 since with_bias=False)
    logits = (-dist * wei).reshape(bblk, t_tile, d)                    # (bblk, tT, D)

    if needs_t_mask:
        # Padded time rows (T was rounded up to a multiple of t_tile) must not
        # contribute to the softmax.
        trow = ti * t_tile + lax.broadcasted_iota(jnp.int32, (1, t_tile, 1), 1)
        logits = jnp.where(trow < t_true, logits, -jnp.inf)

    # ---- online (flash-style) softmax over T, kept UNNORMALIZED:
    m_prev = m_sc[...]                                                  # (bblk, D)
    m_new = jnp.maximum(m_prev, jnp.max(logits, axis=1))                # (bblk, D)
    alpha = jnp.exp(m_prev - m_new)                                     # (bblk, D)
    e = jnp.exp(logits - m_new[:, None, :])                             # (bblk, tT, D)
    den_sc[...] = alpha * den_sc[...] + jnp.sum(e, axis=1)

    # ---- e^T @ x over the T chunk (MXU).  T is the contracting dim of BOTH
    # operands (no transpose); bf16 operands are safe here (f32 accumulate).
    ex = lax.dot_general(e.astype(mxu_dtype), x.astype(mxu_dtype),
                         (((1,), (1,)), ((0,), (0,))),
                         preferred_element_type=jnp.float32)            # (bblk, D, F)
    acc_sc[...] = alpha[:, :, None] * acc_sc[...] + ex
    m_sc[...] = m_new

    @pl.when(ti == pl.num_programs(1) - 1)
    def _finalize():
        # Deferred normalization: w = e / denom, and sum_T w == 1 analytically
        # (the reference's /(1+1e-9) is a no-op in f32), so
        #   out = (e^T @ x) / denom - dic.
        # NOTE: in production use pl.reciprocal(den_sc[...], approx=True) to
        # ride the EUP slot; exact divide kept here for the strict f32 check.
        inv = 1.0 / den_sc[...]                                         # (bblk, D)
        out = acc_sc[...] * inv[:, :, None] - dic[None, :, :]           # (bblk, D, F)
        if flatten_out:
            o_ref[...] = out.reshape(bblk, d * f).astype(o_ref.dtype)
        else:
            o_ref[...] = out.astype(o_ref.dtype)


def lde_forward(x, dic, wei, *, bblk=None, t_tile=None, mxu_dtype=jnp.float32):
    """x: (B, T, F); dic: (D, F); wei: (D,). Returns (B, D*F) float32.

    mxu_dtype: operand dtype for the pooling contraction e^T@x (bf16 on
    v5e/v6e/v7x for ~2-4x MXU throughput and fewer bytes; f32 for bitwise
    closeness to the reference).
    """
    B, T, F = x.shape
    D, Fd = dic.shape
    assert Fd == F

    if bblk is None:
        bblk = 8                                  # sublane-safe batch block
    if t_tile is None:
        # Bound VMEM independently of sequence length; chunks stay (8,128)-safe.
        t_tile = T if T <= 128 else 128

    # Pad batch so the "parallel" batch axis has >= 2 steps (v7x: 2 TensorCores,
    # and it gives the pipeliner a step to prefetch); padded rows are sliced off.
    B_pad = pl.cdiv(B, bblk) * bblk
    if B_pad // bblk < 2:
        B_pad = 2 * bblk
    T_pad = pl.cdiv(T, t_tile) * t_tile
    if (B_pad, T_pad) != (B, T):
        x = jnp.pad(x, ((0, B_pad - B), (0, T_pad - T), (0, 0)))

    dic_f32 = dic.astype(jnp.float32)
    wei2d = wei.reshape(1, D).astype(jnp.float32)
    dsq = jnp.sum(dic_f32 * dic_f32, axis=-1).reshape(1, D)   # hoisted ||d||^2

    # Lane-dense output: keep 3-D (free reshape outside) when F is already a
    # multiple of 128; otherwise flatten to D*F inside the kernel.
    flatten_out = (F % 128 != 0)
    if flatten_out:
        out_shape = jax.ShapeDtypeStruct((B_pad, D * F), jnp.float32)
        out_spec = pl.BlockSpec((bblk, D * F), lambda b, t: (b, 0))
    else:
        out_shape = jax.ShapeDtypeStruct((B_pad, D, F), jnp.float32)
        out_spec = pl.BlockSpec((bblk, D, F), lambda b, t: (b, 0, 0))

    kernel = functools.partial(
        lde_kernel,
        t_true=T,
        needs_t_mask=(T_pad != T),
        flatten_out=flatten_out,
        mxu_dtype=mxu_dtype,
    )

    out = pl.pallas_call(
        kernel,
        out_shape=out_shape,
        grid_spec=pltpu.PrefetchScalarGridSpec(
            num_scalar_prefetch=0,
            grid=(B_pad // bblk, T_pad // t_tile),
            in_specs=[
                pl.BlockSpec((bblk, t_tile, F), lambda b, t: (b, t, 0)),
                pl.BlockSpec((D, F), lambda b, t: (0, 0)),
                pl.BlockSpec((1, D), lambda b, t: (0, 0)),
                pl.BlockSpec((1, D), lambda b, t: (0, 0)),
            ],
            out_specs=out_spec,
            scratch_shapes=[
                pltpu.VMEM((bblk, D), jnp.float32),        # running max
                pltpu.VMEM((bblk, D), jnp.float32),        # running denom
                pltpu.VMEM((bblk, D, F), jnp.float32),     # running e^T @ x
            ],
        ),
        compiler_params=pltpu.CompilerParams(
            dimension_semantics=("parallel", "arbitrary"),
        ),
    )(x, dic_f32, wei2d, dsq)

    if not flatten_out:
        out = out.reshape(B_pad, D * F)
    return out[:B]


def lde_reference(x, dic, wei):
    """Pure-JAX reference mirroring the PyTorch forward."""
    r = x[:, :, None, :] - dic[None, None, :, :]          # (B, T, D, F)
    dist = jnp.sqrt(jnp.sum(r * r, axis=-1))              # (B, T, D)
    logits = -dist * wei[None, None, :]                   # (B, T, D)
    w = jax.nn.softmax(logits, axis=1)                    # softmax over T
    w = w[..., None]                                      # (B, T, D, 1)
    w = w / (jnp.sum(w, axis=1, keepdims=True) + 1e-9)
    out = jnp.sum(w * r, axis=1)                          # (B, D, F)
    return out.reshape(out.shape[0], -1)


if __name__ == "__main__":
    key = jax.random.PRNGKey(0)
    kx1, kx2, kdic = jax.random.split(key, 3)

    # ---- Test 1: module's small shapes (B=2, T=8, F=32, D=4), f32, strict.
    B, T, F, D = 2, 8, 32, 4
    x1 = jax.random.normal(kx1, (B, T, F), dtype=jnp.float32)
    dic = jax.random.uniform(kdic, (D, F), dtype=jnp.float32, minval=-1.0, maxval=1.0)
    wei = jnp.ones((D,), dtype=jnp.float32)

    out1 = jax.block_until_ready(lde_forward(x1, dic, wei))
    ref1 = lde_reference(x1, dic, wei)
    assert out1.shape == (B, D * F)
    assert jnp.allclose(out1, ref1, atol=1e-5, rtol=1e-5), "mismatch vs reference (f32)"

    # ---- Test 2: multi T-step path (T=12, t_tile=8 -> 2 T blocks + tail mask),
    # multiple batch grid steps, f32.
    B2, T2 = 4, 12
    x2 = jax.random.normal(kx2, (B2, T2, F), dtype=jnp.float32)
    out2 = jax.block_until_ready(lde_forward(x2, dic, wei, t_tile=8))
    ref2 = lde_reference(x2, dic, wei)
    assert out2.shape == (B2, D * F)
    assert jnp.allclose(out2, ref2, atol=1e-4, rtol=1e-4), "mismatch vs reference (tiled T)"

    # ---- Test 3: bf16 MXU operands for the pooling contraction (prod path on
    # v5e/v6e/v7x); looser tolerance from bf16 rounding.
    out3 = jax.block_until_ready(
        lde_forward(x2, dic, wei, t_tile=8, mxu_dtype=jnp.bfloat16))
    assert jnp.allclose(out3, ref2, atol=5e-2, rtol=5e-2), "mismatch vs reference (bf16 MXU)"

    print("KERNEL_OK")
</pallas_src>

<mosaic_0001>
module attributes {stable_mosaic.version = 11 : i64} {
  func.func @lde_kernel(%arg0: i32, %arg1: i32, %arg2: memref<8x8x32xf32, #tpu.memory_space<vmem>>, %arg3: memref<4x32xf32, #tpu.memory_space<vmem>>, %arg4: memref<1x4xf32, #tpu.memory_space<vmem>>, %arg5: memref<1x4xf32, #tpu.memory_space<vmem>>, %arg6: memref<8x128xf32, #tpu.memory_space<vmem>>, %arg7: memref<8x4xf32, #tpu.memory_space<vmem>>, %arg8: memref<8x4xf32, #tpu.memory_space<vmem>>, %arg9: memref<8x4x32xf32, #tpu.memory_space<vmem>>) attributes {dimension_semantics = [#tpu.dimension_semantics<parallel>, #tpu.dimension_semantics<arbitrary>], iteration_bounds = array<i64: 2, 1>, scalar_prefetch = 0 : i64, scratch_operands = 3 : i64, tpu.core_type = #tpu.core_type<tc>, window_params = [{transform_indices = @transform_0, window_bounds = array<i64: 8, 8, 32>}, {pipeline_mode = #tpu.pipeline_mode<synchronous>, transform_indices = @transform_1, window_bounds = array<i64: 4, 32>}, {pipeline_mode = #tpu.pipeline_mode<synchronous>, transform_indices = @transform_2, window_bounds = array<i64: 1, 4>}, {pipeline_mode = #tpu.pipeline_mode<synchronous>, transform_indices = @transform_3, window_bounds = array<i64: 1, 4>}, {transform_indices = @transform_4, window_bounds = array<i64: 8, 128>}]} {
    %c0_i32 = arith.constant 0 : i32
    %0 = arith.cmpi eq, %arg1, %c0_i32 : i32
    %1 = arith.extui %0 : i1 to i32
    %c0_i32_0 = arith.constant 0 : i32
    %2 = arith.cmpi ne, %1, %c0_i32_0 : i32
    scf.if %2 {
      %cst_32 = arith.constant 0xFF800000 : f32
      %51 = vector.broadcast %cst_32 : f32 to vector<8x4xf32>
      %c0_33 = arith.constant 0 : index
      %c0_34 = arith.constant 0 : index
      %52 = vector.load %arg7[%c0_33, %c0_34] : memref<8x4xf32, #tpu.memory_space<vmem>>, vector<8x4xf32>
      tpu.vector_store %arg7[%c0_33, %c0_34], %51 {strides = array<i32>} : memref<8x4xf32, #tpu.memory_space<vmem>>, vector<8x4xf32>,
      %cst_35 = arith.constant 0.000000e+00 : f32
      %53 = vector.broadcast %cst_35 : f32 to vector<8x4xf32>
      %c0_36 = arith.constant 0 : index
      %c0_37 = arith.constant 0 : index
      %54 = vector.load %arg8[%c0_36, %c0_37] : memref<8x4xf32, #tpu.memory_space<vmem>>, vector<8x4xf32>
      tpu.vector_store %arg8[%c0_36, %c0_37], %53 {strides = array<i32>} : memref<8x4xf32, #tpu.memory_space<vmem>>, vector<8x4xf32>,
      %cst_38 = arith.constant 0.000000e+00 : f32
      %55 = vector.broadcast %cst_38 : f32 to vector<8x4x32xf32>
      %c0_39 = arith.constant 0 : index
      %c0_40 = arith.constant 0 : index
      %c0_41 = arith.constant 0 : index
      %56 = vector.load %arg9[%c0_39, %c0_40, %c0_41] : memref<8x4x32xf32, #tpu.memory_space<vmem>>, vector<8x4x32xf32>
      tpu.vector_store %arg9[%c0_39, %c0_40, %c0_41], %55 {strides = array<i32>} : memref<8x4x32xf32, #tpu.memory_space<vmem>>, vector<8x4x32xf32>,
    } else {
    }
    %c0 = arith.constant 0 : index
    %c0_1 = arith.constant 0 : index
    %c0_2 = arith.constant 0 : index
    %3 = vector.load %arg2[%c0, %c0_1, %c0_2] : memref<8x8x32xf32, #tpu.memory_space<vmem>>, vector<8x8x32xf32>
    %c0_3 = arith.constant 0 : index
    %c0_4 = arith.constant 0 : index
    %4 = vector.load %arg3[%c0_3, %c0_4] : memref<4x32xf32, #tpu.memory_space<vmem>>, vector<4x32xf32>
    %c0_5 = arith.constant 0 : index
    %c0_6 = arith.constant 0 : index
    %5 = vector.load %arg4[%c0_5, %c0_6] : memref<1x4xf32, #tpu.memory_space<vmem>>, vector<1x4xf32>
    %c0_7 = arith.constant 0 : index
    %c0_8 = arith.constant 0 : index
    %6 = vector.load %arg5[%c0_7, %c0_8] : memref<1x4xf32, #tpu.memory_space<vmem>>, vector<1x4xf32>
    %7 = vector.shape_cast %3 : vector<8x8x32xf32> to vector<64x32xf32>
    %cst = arith.constant dense<0.000000e+00> : vector<64x4xf32>
    %8 = tpu.matmul %7, %4, %cst {dimension_numbers = #tpu.dot_dimension_numbers<[1], [1], [0], [0], [0, 0, 1, 0], [], []>} : vector<64x32xf32>, vector<4x32xf32>, vector<64x4xf32> -> vector<64x4xf32>
    %9 = arith.mulf %7, %7 : vector<64x32xf32>
    %cst_9 = arith.constant dense<0.000000e+00> : vector<64xf32>
    %10 = vector.multi_reduction <add>, %9, %cst_9 [1] : vector<64x32xf32> to vector<64xf32>
    %11 = vector.shape_cast %10 : vector<64xf32> to vector<64x1xf32>
    %cst_10 = arith.constant 2.000000e+00 : f32
    %12 = vector.broadcast %cst_10 : f32 to vector<64x4xf32>
    %13 = arith.mulf %12, %8 : vector<64x4xf32>
    %14 = vector.broadcast %11 : vector<64x1xf32> to vector<64x4xf32>
    %15 = arith.subf %14, %13 : vector<64x4xf32>
    %16 = vector.broadcast %6 : vector<1x4xf32> to vector<64x4xf32>
    %17 = arith.addf %15, %16 : vector<64x4xf32>
    %cst_11 = arith.constant 0.000000e+00 : f32
    %18 = vector.broadcast %cst_11 : f32 to vector<64x4xf32>
    %19 = arith.maximumf %17, %18 : vector<64x4xf32>
    %20 = math.sqrt %19 : vector<64x4xf32>
    %cst_12 = arith.constant 0.000000e+00 : f32
    %21 = vector.broadcast %cst_12 : f32 to vector<64x4xf32>
    %22 = arith.subf %21, %20 : vector<64x4xf32>
    %23 = vector.broadcast %5 : vector<1x4xf32> to vector<64x4xf32>
    %24 = arith.mulf %22, %23 : vector<64x4xf32>
    %25 = vector.shape_cast %24 : vector<64x4xf32> to vector<8x8x4xf32>
    %c0_13 = arith.constant 0 : index
    %c0_14 = arith.constant 0 : index
    %26 = vector.load %arg7[%c0_13, %c0_14] : memref<8x4xf32, #tpu.memory_space<vmem>>, vector<8x4xf32>
    %cst_15 = arith.constant dense<0xFF800000> : vector<8x4xf32>
    %27 = vector.multi_reduction <maximumf>, %25, %cst_15 [1] : vector<8x8x4xf32> to vector<8x4xf32>
    %28 = arith.maximumf %26, %27 : vector<8x4xf32>
    %29 = arith.subf %26, %28 : vector<8x4xf32>
    %30 = math.exp %29 : vector<8x4xf32>
    %31 = vector.shape_cast %28 : vector<8x4xf32> to vector<8x1x4xf32>
    %32 = vector.broadcast %31 : vector<8x1x4xf32> to vector<8x8x4xf32>
    %33 = arith.subf %25, %32 : vector<8x8x4xf32>
    %34 = math.exp %33 : vector<8x8x4xf32>
    %c0_16 = arith.constant 0 : index
    %c0_17 = arith.constant 0 : index
    %35 = vector.load %arg8[%c0_16, %c0_17] : memref<8x4xf32, #tpu.memory_space<vmem>>, vector<8x4xf32>
    %36 = arith.mulf %30, %35 : vector<8x4xf32>
    %cst_18 = arith.constant dense<0.000000e+00> : vector<8x4xf32>
    %37 = vector.multi_reduction <add>, %34, %cst_18 [1] : vector<8x8x4xf32> to vector<8x4xf32>
    %38 = arith.addf %36, %37 : vector<8x4xf32>
    %c0_19 = arith.constant 0 : index
    %c0_20 = arith.constant 0 : index
    %39 = vector.load %arg8[%c0_19, %c0_20] : memref<8x4xf32, #tpu.memory_space<vmem>>, vector<8x4xf32>
    tpu.vector_store %arg8[%c0_19, %c0_20], %38 {strides = array<i32>} : memref<8x4xf32, #tpu.memory_space<vmem>>, vector<8x4xf32>,
    %cst_21 = arith.constant dense<0.000000e+00> : vector<8x4x32xf32>
    %40 = tpu.matmul %34, %3, %cst_21 {dimension_numbers = #tpu.dot_dimension_numbers<[1], [1], [2], [2], [0, 0, 0, 2, 1, 2], [0], [0]>} : vector<8x8x4xf32>, vector<8x8x32xf32>, vector<8x4x32xf32> -> vector<8x4x32xf32>
    %41 = vector.shape_cast %30 : vector<8x4xf32> to vector<8x4x1xf32>
    %c0_22 = arith.constant 0 : index
    %c0_23 = arith.constant 0 : index
    %c0_24 = arith.constant 0 : index
    %42 = vector.load %arg9[%c0_22, %c0_23, %c0_24] : memref<8x4x32xf32, #tpu.memory_space<vmem>>, vector<8x4x32xf32>
    %43 = vector.broadcast %41 : vector<8x4x1xf32> to vector<8x4x32xf32>
    %44 = arith.mulf %43, %42 : vector<8x4x32xf32>
    %45 = arith.addf %44, %40 : vector<8x4x32xf32>
    %c0_25 = arith.constant 0 : index
    %c0_26 = arith.constant 0 : index
    %c0_27 = arith.constant 0 : index
    %46 = vector.load %arg9[%c0_25, %c0_26, %c0_27] : memref<8x4x32xf32, #tpu.memory_space<vmem>>, vector<8x4x32xf32>
    tpu.vector_store %arg9[%c0_25, %c0_26, %c0_27], %45 {strides = array<i32>} : memref<8x4x32xf32, #tpu.memory_space<vmem>>, vector<8x4x32xf32>,
    %c0_28 = arith.constant 0 : index
    %c0_29 = arith.constant 0 : index
    %47 = vector.load %arg7[%c0_28, %c0_29] : memref<8x4xf32, #tpu.memory_space<vmem>>, vector<8x4xf32>
    tpu.vector_store %arg7[%c0_28, %c0_29], %28 {strides = array<i32>} : memref<8x4xf32, #tpu.memory_space<vmem>>, vector<8x4xf32>,
    %c0_i32_30 = arith.constant 0 : i32
    %48 = arith.cmpi eq, %arg1, %c0_i32_30 : i32
    %49 = arith.extui %48 : i1 to i32
    %c0_i32_31 = arith.constant 0 : i32
    %50 = arith.cmpi ne, %49, %c0_i32_31 : i32
    scf.if %50 {
      %c0_32 = arith.constant 0 : index
      %c0_33 = arith.constant 0 : index
      %51 = vector.load %arg8[%c0_32, %c0_33] : memref<8x4xf32, #tpu.memory_space<vmem>>, vector<8x4xf32>
      %cst_34 = arith.constant 1.000000e+00 : f32
      %52 = vector.broadcast %cst_34 : f32 to vector<8x4xf32>
      %53 = arith.divf %52, %51 : vector<8x4xf32>
      %c0_35 = arith.constant 0 : index
      %c0_36 = arith.constant 0 : index
      %c0_37 = arith.constant 0 : index
      %54 = vector.load %arg9[%c0_35, %c0_36, %c0_37] : memref<8x4x32xf32, #tpu.memory_space<vmem>>, vector<8x4x32xf32>
      %55 = vector.shape_cast %53 : vector<8x4xf32> to vector<8x4x1xf32>
      %56 = vector.broadcast %55 : vector<8x4x1xf32> to vector<8x4x32xf32>
      %57 = arith.mulf %54, %56 : vector<8x4x32xf32>
      %58 = vector.shape_cast %4 : vector<4x32xf32> to vector<1x4x32xf32>
      %59 = vector.broadcast %58 : vector<1x4x32xf32> to vector<8x4x32xf32>
      %60 = arith.subf %57, %59 : vector<8x4x32xf32>
      %61 = vector.shape_cast %60 : vector<8x4x32xf32> to vector<8x128xf32>
      %c0_38 = arith.constant 0 : index
      %c0_39 = arith.constant 0 : index
      %62 = vector.load %arg6[%c0_38, %c0_39] : memref<8x128xf32, #tpu.memory_space<vmem>>, vector<8x128xf32>
      tpu.vector_store %arg6[%c0_38, %c0_39], %61 {strides = array<i32>} : memref<8x128xf32, #tpu.memory_space<vmem>>, vector<8x128xf32>,
    } else {
    }
    return
  }
  func.func @transform_0(%arg0: i32, %arg1: i32) -> (i32, i32, i32) {
    %c0_i32 = arith.constant 0 : i32
    %c0_i32_0 = arith.constant 0 : i32
    return %arg0, %arg1, %c0_i32 : i32, i32, i32
  }
  func.func @transform_1(%arg0: i32, %arg1: i32) -> (i32, i32) {
    %c0_i32 = arith.constant 0 : i32
    %c0_i32_0 = arith.constant 0 : i32
    %c0_i32_1 = arith.constant 0 : i32
    return %c0_i32, %c0_i32_0 : i32, i32
  }
  func.func @transform_2(%arg0: i32, %arg1: i32) -> (i32, i32) {
    %c0_i32 = arith.constant 0 : i32
    %c0_i32_0 = arith.constant 0 : i32
    %c0_i32_1 = arith.constant 0 : i32
    return %c0_i32, %c0_i32_0 : i32, i32
  }
  func.func @transform_3(%arg0: i32, %arg1: i32) -> (i32, i32) {
    %c0_i32 = arith.constant 0 : i32
    %c0_i32_0 = arith.constant 0 : i32
    %c0_i32_1 = arith.constant 0 : i32
    return %c0_i32, %c0_i32_0 : i32, i32
  }
  func.func @transform_4(%arg0: i32, %arg1: i32) -> (i32, i32) {
    %c0_i32 = arith.constant 0 : i32
    %c0_i32_0 = arith.constant 0 : i32
    return %arg0, %c0_i32 : i32, i32
  }
}

</mosaic_0001>

<bundles_post_ra>
// kernel: tpu_custom_call.1
= control target key start
LH: loop header
LB: loop body
LE: loop exit
PB: predicated region body
PF: predicated region fallthrough
CT: control target
= control target key end

     0   :  { %s2359_s0 = inlined_call_operand.hbm [shape: f32[16,8,32], index: 0, kind: input, shape index: {}]   ;;  %s2360_s1 = inlined_call_operand.hbm [shape: f32[4,32], index: 1, kind: input, shape index: {}]   ;;  %s2361_s2 = inlined_call_operand.vmem [shape: f32[1,4], index: 2, kind: input, shape index: {}]   ;;  %s2362_s3 = inlined_call_operand.vmem [shape: f32[1,4], index: 3, kind: input, shape index: {}]   ;;  %s2363_s4 = inlined_call_operand.hbm [shape: f32[16,128], index: 4, kind: output, shape index: {}]  }
   0x1   :  { %2366 = sst [smem:[#allocation15_spill]] %s2360_s1 }
   0x2   :  { %9 = vsyncpa [#allocation6], 0 }
   0x3   :  { %11 = vsyncpa [#allocation6 + $0x1], 0 }
   0x4   :  { %12 = vsyncpa [#allocation9], 0 }
   0x5   :  { %13 = vsyncpa [#allocation7], 0 }
   0x6   :  { %15 = vsyncpa [#allocation7 + $0x1], 0  ;;  %s1891_s15 = smov 0   ;;  %s1893_s16 = smov 0  }
   0x7   :  { %s1895_s17 = smov 0   ;;  %s1897_s18 = smov 0  }
   0x8   :  { %s1899_s19 = smov 0   ;;  %s1901_s20 = smov 0  }
   0x9 LB: > { %2367 = sst [smem:[#allocation14_spill]] %s1854_s20  ;;  %s1547_s21 = sadd.s32 4294967295, %s1854_s20   ;;  %s1854_s20 = sphi %s1901_s20, %s21_s20   ;;  %s1850_s19 = sphi %s1899_s19, %s2381_s19   ;;  %s1846_s18 = sphi %s1897_s18, %s2380_s18   ;;  %s1842_s17 = sphi %s1895_s17, %s2379_s17   ;;  %s1838_s16 = sphi %s1893_s16, %s2378_s16   ;;  %s1834_s15 = sphi %s1891_s15, %s2377_s15  }
   0xa   : > { %s1548_s22 = sadd.s32 4294967294, %s1854_s20   ;;  %s42_s23 = sadd.s32 1, %s1842_s17 }
   0xb   : > { %p49_p0 = scmp.ne.s32.totalorder %s1842_s17, %s1838_s16  ;;  %p50_p1 = scmp.eq.s32.totalorder %s1854_s20, 0 }
   0xc   : > { %p55_p2 = scmp.ne.s32.totalorder %s1838_s16, %s1834_s15  ;;  %p1929_p3 = scmp.eq.s32.totalorder %s1547_s21, 0 }
   0xd   : > { %p142_p4 = scmp.eq.s32.totalorder %s1547_s21, 1  ;;  %p1933_p5 = por %p50_p1, %p49_p0 }
   0xe   : > { %p148_p6 = scmp.eq.s32.totalorder %s1548_s22, 1  ;;  %p1939_p7 = por %p1929_p3, %p55_p2 }
   0xf   : > { %p1943_p8 = por %p142_p4, %p49_p0  ;;  %p1549_p10 = scmp.ge.s32.totalorder %s1854_s20, 1 }
  0x10   : > { %p1947_p9 = por %p148_p6, %p55_p2  ;;  %p155_p11 = scmp.lt.s32.totalorder %s1854_s20, 3 }
  0x11   : > { %s2373_s1 = sld [smem:[#allocation15_spill]]  ;;  %s1856_s7 = smov [#allocation8]  }
  0x12   : > { %p1956_p12 = pnand %p1549_p10, %p155_p11  ;;  %s169_s8 = sshll.u32 %s1856_s7, 4  ;;  %s170_s8 = int_to_ptr.vmem [resolvable:$true] %s169_s8 }
  0x13   : > { %p1551_p13 = scmp.ge.s32.totalorder %s1854_s20, 2  ;;  %p1605_p1 = scmp.lt.s32.totalorder %s1854_s20, 2 }
  0x14   : > { %p1592_p0 = pneg %p1956_p12  ;;  %s33_s10 = sadd.s32 1, %s1850_s19 }
  0x15   : > { %p1968_p4 = pnand %p1605_p1, %p1933_p5  ;;  %p35_p6 = scmp.ge.s32.totalorder %s33_s10, 2 }
  0x16   : > { %p1593_p2 = pnand %p1592_p0, %p1929_p3  ;;  %s186_s11 = sand.u32 1, %s1842_s17  }
  0x17   : > { %s167_s5 = sshll.u32 %s2373_s1, 4  ;;  %s2383_s10 = smov (%p35_p6, %s33_s10), 0  ;;  %s168_s5 = int_to_ptr.hbm [resolvable:$true] %s167_s5 }
  0x18   : > { %1595 = dma.hbm_to_vmem [thread:$0]  (!%p1593_p2), %s168_s5, 64, %s170_s8, [#allocation9]  }
  0x19   : > { %s1552_s12 = sshll.u32 %s186_s11, 6  ;;  %s37_s13 = ssub.s32 %s1850_s19, %s2383_s10 }
  0x1a   : > { %p40_p10 = scmp.eq.s32.totalorder %s37_s13, 0  ;;  %s1580_s14 = sshll.u32 %s1850_s19, 6 }
  0x1b   : > { %s196_s25 = scalar_lea.hbm %s2359_s0, %s1580_s14  ;;  %s190_s29 = scalar_lea.vmem [#allocation5], %s1552_s12 }
  0x1c   : > { %s199_s30 = sshll.u32 %s190_s29, 4  ;;  %s197_s1 = sshll.u32 %s196_s25, 4  ;;  %s200_s30 = int_to_ptr.vmem [resolvable:$true] %s199_s30  ;;  %s198_s1 = int_to_ptr.hbm [resolvable:$true] %s197_s1 }
  0x1d   : > { %s1985_s7 = scalar_select %p40_p10, %s1842_s17, %s42_s23  }
  0x1e   : > { %s187_s5 = scalar_lea.sflag [#allocation6], %s186_s11  ;;  %s1857_s8 = smov 128  }
  0x1f   : > { %s1858_s20 = smov 8   ;;  %211 = sbr.rel (%p1956_p12) target bundleno = 763 (0x2fb), region = 36 }
  0x20   : > { %1599 = dma.hbm_to_vmem [thread:$0]  (!%p1968_p4), %s198_s1, 1024, %s200_s30, %s187_s5, %s1857_s8, %s1857_s8, %s1858_s20  }
  0x21   : > { %s1992_s13 = sand.u32 (!%p1956_p12), 1, %s1838_s16  }
  0x22   : > { %s1556_s12 = sshll.u32 (!%p1956_p12), %s1992_s13, 6  ;;  %s214_s23 = scalar_lea.sflag (!%p1956_p12), [#allocation6], %s1992_s13 }
  0x23   : > { %s1996_s14 = scalar_lea.vmem (!%p1956_p12), [#allocation5], %s1556_s12 }
  0x24   : > { %1821 = dma.done.wait (%p1939_p7), %s214_s23, 1024  }
  0x25   : > { %1823 = vsyncadd (%p1939_p7), %s214_s23, 4294966272 }
  0x26   : > { %1825 = dma.done.wait (%p1929_p3), [#allocation9], 64  }
  0x27   : > { %1827 = vsyncadd (%p1929_p3), [#allocation9], 4294967232  ;;  %vm276_vm0 = vcmask 261120   ;;  %v273_v0 = vld [vmem:[#allocation8] sm:$0xf]  ;;  %v270_v3 = vld [vmem:[%s1996_s14 + $0x28] sm:$0xff] }
  0x28   : > { %v265_v1 = vld [vmem:[%s1996_s14] sm:$0xff]  ;;  %1559 = vmatpush.xpose.msk.msra.mxu0 %vm276_vm0, %v273_v0  ;;  %1581 = vmatpush.xpose.msk.msra.mxu1 %vm276_vm0, %v273_v0  ;;  %v2014_v6 = vld [vmem:[%s1996_s14 + $0x30] sm:$0xff]  ;;  %v266_v7 = vld [vmem:[%s1996_s14 + $0x8] sm:$0xff]  ;;  %v350_v15 = vmul.f32 %v270_v3, %v270_v3  ;;  %vm253_vm1 = vcmask 31744   ;;  %s1863_s6 = smov 96   ;;  %s1864_s9 = smov 64  }
  0x29   : > { %v269_v2 = vld [vmem:[%s1996_s14 + $0x20] sm:$0xff]  ;;  %v345_v4 = vmul.f32 %v265_v1, %v265_v1  ;;  %1582 = vmatpush.xpose.msk.msra.mxu2 %vm276_vm0, %v273_v0  ;;  %1583 = vmatpush.xpose.msk.msra.mxu3 %vm276_vm0, %v273_v0  ;;  %v267_v8 = vld [vmem:[%s1996_s14 + $0x10] sm:$0xff]  ;;  %v268_v13 = vld [vmem:[%s1996_s14 + $0x18] sm:$0xff]  ;;  %v346_v14 = vmul.f32 %v266_v7, %v266_v7  ;;  %v351_v21 = vmul.f32 %v2014_v6, %v2014_v6  ;;  %s1865_s11 = smov 32   ;;  %s1558_s21 = sshll.u32 %s1992_s13, 3 }
  0x2a   : > { %v349_v5 = vmul.f32 %v269_v2, %v269_v2  ;;  %v347_v11 = vmul.f32 %v267_v8, %v267_v8  ;;  %v348_v16 = vmul.f32 %v268_v13, %v268_v13  ;;  %v2028_v17 = vld [vmem:[%s1996_s14 + $0x38] sm:$0xff]  ;;  %v368_v19 = vsel %vm276_vm0, %v350_v15, 0.0  ;;  %v2047_v32 = vld [vmem:[%s2362_s3] ss:$0 sm:$0xff]  ;;  %s1577_s22 = sshll.u32 %s1846_s18, 3  ;;  %s247_s5 = scalar_lea.vmem [#allocation10], %s1558_s21 }
  0x2b   : > { %v353_v9 = vsel %vm276_vm0, %v345_v4, 0.0  ;;  %1560 = vmatmul.msk.f32.vlgmr.msra.gmra.mxu0 %vm276_vm0, %v265_v1  ;;  %1564 = vmatmul.msk.f32.vlgmr.msra.gmra.mxu1 %vm276_vm0, %v269_v2  ;;  %v356_v18 = vsel %vm276_vm0, %v346_v14, 0.0  ;;  %v352_v22 = vmul.f32 %v2028_v17, %v2028_v17  ;;  %v371_v23 = vsel %vm276_vm0, %v351_v21, 0.0  ;;  %s1452_s30 = scalar_lea.hbm %s2363_s4, %s1577_s22  ;;  %s1454_s8 = sshll.u32 %s247_s5, 4  ;;  %s1455_s8 = int_to_ptr.vmem [resolvable:$true] %s1454_s8 }
  0x2c   : > { %v365_v10 = vsel %vm276_vm0, %v349_v5, 0.0  ;;  %1565 = vmatmul.msk.f32.vlgmr.msra.gmra.mxu2 %vm276_vm0, %v270_v3  ;;  %1566 = vmatmul.msk.f32.vlgmr.msra.gmra.mxu3 %vm276_vm0, %v2014_v6  ;;  %v359_v12 = vsel %vm276_vm0, %v347_v11, 0.0  ;;  %v362_v20 = vsel %vm276_vm0, %v348_v16, 0.0  ;;  %s1456_s12 = sshll.u32 %s1452_s30, 4  ;;  %s1442_s18 = scalar_lea.sflag [#allocation7], %s1992_s13  ;;  %s1457_s12 = int_to_ptr.hbm [resolvable:$true] %s1456_s12 }
  0x2d   : > { %842 = vmatpush.msrb.mxu2 %v266_v7  ;;  %897 = vmatpush.msrb.mxu3 %v267_v8  ;;  %v374_v24 = vsel %vm276_vm0, %v352_v22, 0.0  ;;  %s1782_s23 = sshra.s32 %s1457_s12, 4  ;;  %s1788_s24 = scalar_lea.hbm %s2363_s4, 16  ;;  %s1783_s23 = int_to_ptr.hbm [resolvable:$true] %s1782_s23 }
  0x2e   : > { %354 = vadd.xlane.f32.xlu0 %v353_v9  ;;  %366 = vadd.xlane.f32.xlu2 %v365_v10  ;;  %s1784_s14 = scalar_lea.hbm %s1783_s23, 8  ;;  %p1789_p11 = scmp.lt.s32.totalorder %s1783_s23, %s2363_s4 }
  0x2f   : > { %360 = vadd.xlane.f32.xlu1 %v359_v12  ;;  %787 = vmatpush.msrb.mxu1 %v265_v1  ;;  %p1785_p3 = scmp.ne.s32.totalorder %s1783_s23, %s1784_s14  ;;  %p1790_p12 = scmp.lt.s32.totalorder %s1788_s24, %s1784_s14 }
  0x30   : > { %1007 = vmatpush.msra.mxu2 %v269_v2  ;;  %1062 = vmatpush.msra.mxu3 %v270_v3 }
  0x31   : > { %952 = vmatpush.msra.mxu1 %v268_v13  ;;  %p1786_p5 = pnand %p1785_p3, %p1943_p8  ;;  %p1791_p0 = por %p1790_p12, %p1789_p11 }
  0x33   : > { %1561 = vmatmul.msk.f32.gmra.mxu0 %vm276_vm0, %v266_v7  ;;  %p1787_p7 = pneg %p1786_p5 }
  0x34   : > { %1567 = vmatmul.msk.f32.gmra.mxu3 %vm276_vm0, %v2028_v17 }
  0x35   : > { %p1792_p1 = pnand %p1791_p0, %p1787_p7 }
  0x36   : > { %357 = vadd.xlane.f32.xlu0 %v356_v18  ;;  %369 = vadd.xlane.f32.xlu2 %v368_v19 }
  0x37   : > { %363 = vadd.xlane.f32.xlu1 %v362_v20 }
  0x3b   : > { %1562 = vmatmul.msk.f32.gmra.mxu0 %vm276_vm0, %v267_v8 }
  0x3e   : > { %372 = vadd.xlane.f32.xlu0 %v371_v23 }
  0x3f   : > { %375 = vadd.xlane.f32.xlu1 %v374_v24 }
  0x43   : > { %1563 = vmatmul.msk.f32.gmra.mxu0 %vm276_vm0, %v268_v13 }
  0xa1   : > { %v355_v25 = vpop.xlane.xlu0 %354  ;;  %v367_v27 = vpop.xlane.xlu2 %366 }
  0xa2   : > { %v361_v26 = vpop.xlane.xlu1 %360 }
  0xa8   : > { %v333_v28 = vpop.f32.mrf.mxu1  ;;  %v321_v31 = vpop.f32.mrf.mxu0 }
  0xa9   : > { %v358_v29 = vpop.xlane.xlu0 %357  ;;  %v381_v30 = vmul.f32 2.0, %v333_v28  ;;  %v377_v33 = vmul.f32 2.0, %v321_v31  ;;  %v370_v43 = vpop.xlane.xlu2 %369 }
  0xaa   : > { %v2050_v37 = vpop.xlane.xlu1 %363 }
  0xab   : > { %v389_v34 = vsub.f32 %v367_v27, %v381_v30  ;;  %v385_v35 = vsub.f32 %v355_v25, %v377_v33 }
  0xad   : > { %v396_v36 = vadd.f32 %v2047_v32, %v385_v35  ;;  %v400_v38 = vadd.f32 %v2047_v32, %v389_v34 }
  0xaf   : > { %v336_v39 = vpop.f32.mrf.mxu2  ;;  %v339_v40 = vpop.f32.mrf.mxu3  ;;  %v2053_v45 = vmax.f32 %v396_v36, 0.0  ;;  %v2055_v47 = vmax.f32 %v400_v38, 0.0 }
  0xb0   : > { %v382_v41 = vmul.f32 2.0, %v336_v39  ;;  %v383_v42 = vmul.f32 2.0, %v339_v40  ;;  %v324_v46 = vpop.f32.mrf.mxu0 }
  0xb1   : > { %v373_v44 = vpop.xlane.xlu0 %372  ;;  %v378_v50 = vmul.f32 2.0, %v324_v46  ;;  %1671 = vrsqrt.f32 %v2053_v45  ;;  %vm467_vm2 = vcmp.eq.f32.partialorder %v2055_v47, inf  ;;  %vm469_vm3 = vcmp.eq.f32.partialorder %v2055_v47, 0.0 }
  0xb2   : > { %v390_v48 = vsub.f32 %v370_v43, %v382_v41  ;;  %v391_v49 = vsub.f32 %v373_v44, %v383_v42  ;;  %1673 = vrsqrt.f32 %v2055_v47  ;;  %v376_v59 = vpop.xlane.xlu1 %375  ;;  %vm419_vm4 = vcmp.eq.f32.partialorder %v2053_v45, inf }
  0xb3   : > { %v386_v53 = vsub.f32 %v358_v29, %v378_v50  ;;  %vm421_vm6 = vcmp.eq.f32.partialorder %v2053_v45, 0.0 }
  0xb4   : > { %v401_v51 = vadd.f32 %v2047_v32, %v390_v48  ;;  %v402_v52 = vadd.f32 %v2047_v32, %v391_v49 }
  0xb5   : > { %v397_v56 = vadd.f32 %v2047_v32, %v386_v53 }
  0xb6   : > { %v2061_v54 = vmax.f32 %v401_v51, 0.0  ;;  %v2063_v55 = vmax.f32 %v402_v52, 0.0  ;;  %v470_v52 = vand.u32 2147483648, %v2055_v47 }
  0xb7   : > { %v342_v57 = vpop.f32.mrf.mxu3  ;;  %v1672_v61 = vpop.eup %1671  ;;  %v2068_v62 = vmax.f32 %v397_v56, 0.0 }
  0xb8   : > { %v384_v58 = vmul.f32 2.0, %v342_v57  ;;  %v327_v60 = vpop.f32.mrf.mxu0  ;;  %1675 = vrsqrt.f32 %v2061_v54  ;;  %v1674_v1 = vpop.eup %1673  ;;  %v413_v2 = vmul.f32 %v1672_v61, %v2053_v45  ;;  %vm479_vm7 = vcmp.eq.f32.partialorder %v2061_v54, inf }
  0xb9   : > { %1677 = vrsqrt.f32 %v2063_v55  ;;  %v379_v0 = vmul.f32 2.0, %v327_v60  ;;  %v461_v7 = vmul.f32 %v1674_v1, %v2055_v47  ;;  %vm431_vm5 = vcmp.eq.f32.partialorder %v2068_v62, inf }
  0xba   : > { %v392_v63 = vsub.f32 %v376_v59, %v384_v58  ;;  %1679 = vrsqrt.f32 %v2068_v62  ;;  %v414_v11 = vmul.f32 %v1672_v61, %v413_v2  ;;  %vm481_vm8 = vcmp.eq.f32.partialorder %v2061_v54, 0.0 }
  0xbb   : > { %v387_v4 = vsub.f32 %v361_v26, %v379_v0  ;;  %v462_v14 = vmul.f32 %v1674_v1, %v461_v7  ;;  %v434_v0 = vand.u32 2147483648, %v2068_v62  ;;  %vm433_vm9 = vcmp.eq.f32.partialorder %v2068_v62, 0.0 }
  0xbc   : > { %v403_v3 = vadd.f32 %v2047_v32, %v392_v63  ;;  %v415_v19 = vmul.f32 0.5, %v414_v11  ;;  %v422_v63 = vand.u32 2147483648, %v2053_v45  ;;  %vm491_vm10 = vcmp.eq.f32.partialorder %v2063_v55, inf }
  0xbd   : > { %v398_v9 = vadd.f32 %v2047_v32, %v387_v4  ;;  %v463_v23 = vmul.f32 0.5, %v462_v14  ;;  %vm493_vm11 = vcmp.eq.f32.partialorder %v2063_v55, 0.0 }
  0xbe   : > { %v1676_v5 = vpop.eup %1675  ;;  %v2074_v8 = vmax.f32 %v403_v3, 0.0  ;;  %v416_v28 = vsub.f32 1.5, %v415_v19 }
  0xbf   : > { %v1678_v10 = vpop.eup %1677  ;;  %v473_v13 = vmul.f32 %v1676_v5, %v2061_v54  ;;  %v2081_v18 = vmax.f32 %v398_v9, 0.0  ;;  %v464_v33 = vsub.f32 1.5, %v463_v23 }
  0xc0   : > { %1681 = vrsqrt.f32 %v2074_v8  ;;  %v1680_v12 = vpop.eup %1679  ;;  %v485_v15 = vmul.f32 %v1678_v10, %v2063_v55  ;;  %v330_v27 = vpop.f32.mrf.mxu0  ;;  %v417_v40 = vmul.f32 %v1672_v61, %v416_v28  ;;  %vm503_vm12 = vcmp.eq.f32.partialorder %v2074_v8, inf }
  0xc1   : > { %v425_v16 = vmul.f32 %v1680_v12, %v2068_v62  ;;  %v474_v21 = vmul.f32 %v1676_v5, %v473_v13  ;;  %1683 = vrsqrt.f32 %v2081_v18  ;;  %v380_v35 = vmul.f32 2.0, %v330_v27 }
  0xc2   : > { %v486_v24 = vmul.f32 %v1678_v10, %v485_v15  ;;  %v465_v43 = vmul.f32 %v1674_v1, %v464_v33  ;;  %v418_v50 = vmul.f32 %v417_v40, %v2053_v45  ;;  %v1859_v1 = vmov -inf   ;;  %v2129_v15 = vld [vmem:[%s2361_s2] ss:$0 sm:$0xff] }
  0xc3   : > { %v426_v20 = vmul.f32 %v1680_v12, %v425_v16  ;;  %v475_v30 = vmul.f32 0.5, %v474_v21  ;;  %v388_v46 = vsub.f32 %v2050_v37, %v380_v35  ;;  %254 = vst.msk [vmem:[#allocation2] sm:$0xff] %vm253_vm1, %v1859_v1  ;;  %vm443_vm13 = vcmp.eq.f32.partialorder %v2081_v18, inf }
  0xc4   : > { %v487_v34 = vmul.f32 0.5, %v486_v24  ;;  %v466_v37 = vmul.f32 %v465_v43, %v2055_v47  ;;  %v420_v61 = vsel %vm419_vm4, %v2053_v45, %v418_v50  ;;  %vm445_vm14 = vcmp.eq.f32.partialorder %v2081_v18, 0.0 }
  0xc5   : > { %v427_v25 = vmul.f32 0.5, %v426_v20  ;;  %v476_v41 = vsub.f32 1.5, %v475_v30  ;;  %v399_v58 = vadd.f32 %v2047_v32, %v388_v46  ;;  %v423_v9 = vsel %vm421_vm6, %v422_v63, %v420_v61 }
  0xc6   : > { %v1682_v22 = vpop.eup %1681  ;;  %v488_v44 = vsub.f32 1.5, %v487_v34  ;;  %v468_v3 = vsel %vm467_vm2, %v2055_v47, %v466_v37  ;;  %v508_v16 = vsub.f32 0.0, %v423_v9  ;;  %v446_v47 = vand.u32 2147483648, %v2081_v18 }
  0xc7   : > { %v497_v26 = vmul.f32 %v1682_v22, %v2074_v8  ;;  %v428_v29 = vsub.f32 1.5, %v427_v25  ;;  %v1684_v36 = vpop.eup %1683  ;;  %v477_v53 = vmul.f32 %v1676_v5, %v476_v41  ;;  %v2110_v7 = vmax.f32 %v399_v58, 0.0 }
  0xc8   : > { %v437_v42 = vmul.f32 %v1684_v36, %v2081_v18  ;;  %v489_v56 = vmul.f32 %v1678_v10, %v488_v44  ;;  %v482_v10 = vand.u32 2147483648, %v2061_v54  ;;  %v494_v20 = vand.u32 2147483648, %v2063_v55 }
  0xc9   : > { %v498_v31 = vmul.f32 %v1682_v22, %v497_v26  ;;  %v429_v38 = vmul.f32 %v1680_v12, %v428_v29  ;;  %v478_v2 = vmul.f32 %v477_v53, %v2061_v54  ;;  %1685 = vrsqrt.f32 %v2110_v7 }
  0xca   : > { %v438_v51 = vmul.f32 %v1684_v36, %v437_v42  ;;  %v490_v4 = vmul.f32 %v489_v56, %v2063_v55  ;;  %v506_v25 = vand.u32 2147483648, %v2074_v8  ;;  %vm505_vm15 = vcmp.eq.f32.partialorder %v2074_v8, 0.0 }
  0xcb   : > { %v499_v39 = vmul.f32 0.5, %v498_v31  ;;  %v430_v48 = vmul.f32 %v429_v38, %v2068_v62  ;;  %v480_v45 = vsel %vm479_vm7, %v2061_v54, %v478_v2  ;;  %v2148_v31 = vmul.f32 %v2129_v15, %v508_v16 }
  0xcc   : > { %v439_v57 = vmul.f32 0.5, %v438_v51  ;;  %v492_v19 = vsel %vm491_vm10, %v2063_v55, %v490_v4  ;;  %v483_v24 = vsel %vm481_vm8, %v482_v10, %v480_v45  ;;  %v1178_v58 = vlaneseq }
  0xcd   : > { %v500_v49 = vsub.f32 1.5, %v499_v39  ;;  %v432_v59 = vsel %vm431_vm5, %v2068_v62, %v430_v48  ;;  %v471_v62 = vsel %vm469_vm3, %v470_v52, %v468_v3  ;;  %v495_v27 = vsel %vm493_vm11, %v494_v20, %v492_v19 }
  0xce   : > { %v440_v32 = vsub.f32 1.5, %v439_v57  ;;  %v435_v5 = vsel %vm433_vm9, %v434_v0, %v432_v59  ;;  %v512_v23 = vsub.f32 0.0, %v471_v62  ;;  %v513_v33 = vsub.f32 0.0, %v483_v24 }
  0xcf   : > { %v501_v60 = vmul.f32 %v1682_v22, %v500_v49  ;;  %v509_v13 = vsub.f32 0.0, %v435_v5  ;;  %v1686_v30 = vpop.eup %1685  ;;  %v514_v35 = vsub.f32 0.0, %v495_v27  ;;  %v529_v39 = vsel %vm253_vm1, %v2148_v31, -inf }
  0xd0   : > { %v441_v12 = vmul.f32 %v1684_v36, %v440_v32  ;;  %v449_v34 = vmul.f32 %v1686_v30, %v2110_v7  ;;  %v2155_v55 = vmul.f32 %v2129_v15, %v512_v23  ;;  %v2164_v41 = vmul.f32 %v2129_v15, %v513_v33 }
  0xd1   : > { %v502_v11 = vmul.f32 %v501_v60, %v2074_v8  ;;  %v2144_v28 = vmul.f32 %v2129_v15, %v509_v13  ;;  %v2169_v44 = vmul.f32 %v2129_v15, %v514_v35  ;;  %v530_v48 = vrot.slane %v529_v39, 4 }
  0xd2   : > { %v442_v14 = vmul.f32 %v441_v12, %v2081_v18  ;;  %v450_v38 = vmul.f32 %v1686_v30, %v449_v34  ;;  %v557_v43 = vsel %vm253_vm1, %v2155_v55, -inf  ;;  %v564_v52 = vsel %vm253_vm1, %v2164_v41, -inf }
  0xd3   : > { %v504_v21 = vsel %vm503_vm12, %v2074_v8, %v502_v11  ;;  %v536_v36 = vsel %vm253_vm1, %v2144_v28, -inf  ;;  %v558_v37 = vrot.slane %v557_v43, 4  ;;  %v571_v56 = vsel %vm253_vm1, %v2169_v44, -inf }
  0xd4   : > { %v444_v22 = vsel %vm443_vm13, %v2081_v18, %v442_v14  ;;  %v507_v18 = vsel %vm505_vm15, %v506_v25, %v504_v21  ;;  %v451_v42 = vmul.f32 0.5, %v450_v38  ;;  %v537_v46 = vrot.slane %v536_v36, 4 }
  0xd5   : > { %v447_v26 = vsel %vm445_vm14, %v446_v47, %v444_v22  ;;  %v515_v8 = vsub.f32 0.0, %v507_v18  ;;  %v531_v59 = vmax.f32 %v529_v39, %v530_v48  ;;  %v565_v0 = vrot.slane %v564_v52, 4 }
  0xd6   : > { %v510_v29 = vsub.f32 0.0, %v447_v26  ;;  %v452_v51 = vsub.f32 1.5, %v451_v42  ;;  %v538_v57 = vmax.f32 %v536_v36, %v537_v46  ;;  %vm455_vm2 = vcmp.eq.f32.partialorder %v2110_v7, inf }
  0xd7   : > { %v2172_v49 = vmul.f32 %v2129_v15, %v515_v8  ;;  %v458_v1 = vand.u32 2147483648, %v2110_v7  ;;  %v1179_v2 = vshrl.u32 %v1178_v58, 7  ;;  %v572_v32 = vrot.slane %v571_v56, 4 }
  0xd8   : > { %v2151_v54 = vmul.f32 %v2129_v15, %v510_v29  ;;  %v453_v53 = vmul.f32 %v1686_v30, %v452_v51  ;;  %vm457_vm3 = vcmp.eq.f32.partialorder %v2110_v7, 0.0  ;;  %v539_v4 = vrot.slane %v538_v57, 2 }
  0xd9   : > { %v578_v60 = vsel %vm253_vm1, %v2172_v49, -inf  ;;  %1668 = vset.pattern.permute.xlu1 %v1179_v2  ;;  %1667 = vset.pattern.permute.xlu2 %v1179_v2  ;;  %v559_v10 = vmax.f32 %v557_v43, %v558_v37  ;;  %v532_v62 = vrot.slane %v531_v59, 2  ;;  %v566_v45 = vmax.f32 %v564_v52, %v565_v0 }
  0xda   : > { %v543_v40 = vsel %vm253_vm1, %v2151_v54, -inf  ;;  %v454_v63 = vmul.f32 %v453_v53, %v2110_v7  ;;  %v579_v5 = vrot.slane %v578_v60, 4  ;;  %1666 = vset.pattern.permute.xlu0 %v1179_v2  ;;  %v573_v13 = vmax.f32 %v571_v56, %v572_v32 }
  0xdb   : > { %v544_v50 = vrot.slane %v543_v40, 4  ;;  %v1860_v16 = vmov 0.0   ;;  %v560_v47 = vrot.slane %v559_v10, 2  ;;  %v533_v22 = vmax.f32 %v531_v59, %v532_v62 }
  0xdc   : > { %v456_v3 = vsel %vm455_vm2, %v2110_v7, %v454_v63  ;;  %255 = vst.msk [vmem:[#allocation3] sm:$0xff] %vm253_vm1, %v1860_v16  ;;  %v540_v7 = vmax.f32 %v538_v57, %v539_v4  ;;  %v580_v19 = vmax.f32 %v578_v60, %v579_v5  ;;  %v567_v23 = vrot.slane %v566_v45, 2 }
  0xdd   : > { %v545_v61 = vmax.f32 %v543_v40, %v544_v50  ;;  %v459_v9 = vsel %vm457_vm3, %v458_v1, %v456_v3  ;;  %v574_v25 = vrot.slane %v573_v13, 2  ;;  %v534_v18 = vrot.slane %v533_v22, 1 }
  0xde   : > { %v511_v12 = vsub.f32 0.0, %v459_v9  ;;  %v541_v26 = vrot.slane %v540_v7, 1  ;;  %v581_v27 = vrot.slane %v580_v19, 2  ;;  %v568_v33 = vmax.f32 %v566_v45, %v567_v23 }
  0xdf   : > { %v546_v11 = vrot.slane %v545_v61, 2  ;;  %v575_v35 = vmax.f32 %v573_v13, %v574_v25  ;;  %vm593_vm4 = vcmask 1041409   ;;  %v535_v42 = vmax.f32 %v533_v22, %v534_v18 }
  0xe0   : > { %v2186_v14 = vmul.f32 %v2129_v15, %v511_v12  ;;  %v561_v15 = vmax.f32 %v559_v10, %v560_v47  ;;  %v542_v36 = vmax.f32 %v540_v7, %v541_v26  ;;  %v582_v8 = vmax.f32 %v580_v19, %v581_v27 }
  0xe1   : > { %v547_v20 = vmax.f32 %v545_v61, %v546_v11  ;;  %v569_v43 = vrot.slane %v568_v33, 1  ;;  %vm595_vm5 = vcmask 1042434   ;;  %v576_v48 = vrot.slane %v575_v35, 1  ;;  %v527_v61 = vld [vmem:[#allocation2] sm:$0xff] }
  0xe2   : > { %v550_v21 = vsel %vm253_vm1, %v2186_v14, -inf  ;;  %v562_v39 = vrot.slane %v561_v15, 1  ;;  %vm597_vm6 = vcmask 1043459   ;;  %v594_v50 = vsel %vm593_vm4, %v542_v36, %v535_v42 }
  0xe3   : > { %v551_v24 = vrot.slane %v550_v21, 4  ;;  %v548_v30 = vrot.slane %v547_v20, 1  ;;  %v583_v51 = vrot.slane %v582_v8, 1  ;;  %vm599_vm7 = vcmask 1044484  }
  0xe4   : > { %v563_v53 = vmax.f32 %v561_v15, %v562_v39  ;;  %vm601_vm8 = vcmask 1045509   ;;  %v570_v56 = vmax.f32 %v568_v33, %v569_v43  ;;  %vm603_vm9 = vcmask 1046534  }
  0xe5   : > { %v552_v29 = vmax.f32 %v550_v21, %v551_v24  ;;  %v549_v40 = vmax.f32 %v547_v20, %v548_v30  ;;  %v577_v58 = vmax.f32 %v575_v35, %v576_v48  ;;  %vm605_vm10 = vcmask 1047559  }
  0xe6   : > { %v584_v60 = vmax.f32 %v582_v8, %v583_v51  ;;  %vm256_vm11 = vcmask 257024   ;;  %vm768_vm15 = vcmask 64512   ;;  %vm1367_vm2 = vcmask 1047556  }
  0xe7   : > { %v553_v34 = vrot.slane %v552_v29, 2  ;;  %v596_v37 = vsel %vm595_vm5, %v549_v40, %v594_v50  ;;  %260 = vst.msk [vmem:[#allocation4 + $0xc] sm:$0xf] %vm256_vm11, %v1860_v16  ;;  %vm1436_vm3 = vcmask 523264  }
  0xe8   : > { %257 = vst.msk [vmem:[#allocation4] sm:$0xf] %vm256_vm11, %v1860_v16 }
  0xe9   : > { %v554_v38 = vmax.f32 %v552_v29, %v553_v34  ;;  %258 = vst.msk [vmem:[#allocation4 + $0x4] sm:$0xf] %vm256_vm11, %v1860_v16 }
  0xea   : > { %259 = vst.msk [vmem:[#allocation4 + $0x8] sm:$0xf] %vm256_vm11, %v1860_v16 }
  0xeb   : > { %v555_v46 = vrot.slane %v554_v38, 1  ;;  %261 = vst.msk [vmem:[#allocation4 + $0x10] sm:$0xf] %vm256_vm11, %v1860_v16 }
  0xec   : > { %262 = vst.msk [vmem:[#allocation4 + $0x14] sm:$0xf] %vm256_vm11, %v1860_v16 }
  0xed   : > { %v556_v52 = vmax.f32 %v554_v38, %v555_v46  ;;  %263 = vst.msk [vmem:[#allocation4 + $0x18] sm:$0xf] %vm256_vm11, %v1860_v16 }
  0xee   : > { %264 = vst.msk [vmem:[#allocation4 + $0x1c] sm:$0xf] %vm256_vm11, %v1860_v16 }
  0xef   : > { %v598_v57 = vsel %vm597_vm6, %v556_v52, %v596_v37 }
  0xf0   : > { %v600_v59 = vsel %vm599_vm7, %v563_v53, %v598_v57 }
  0xf1   : > { %v602_v63 = vsel %vm601_vm8, %v570_v56, %v600_v59 }
  0xf2   : > { %v604_v0 = vsel %vm603_vm9, %v577_v58, %v602_v63 }
  0xf3   : > { %v606_v1 = vsel %vm605_vm10, %v584_v60, %v604_v0 }
  0xf4   : > { %v608_v2 = vmax.f32 %v527_v61, %v606_v1 }
  0xf6   : > { %v609_v32 = vsub.f32 %v527_v61, %v608_v2  ;;  %1266 = vst.msk [vmem:[#allocation2] sm:$0xff] %vm253_vm1, %v608_v2  ;;  %v620_v3 = vperm.slane %v608_v2, 0  ;;  %v613_v4 = vrot.slane %v608_v2, 1  ;;  %v615_v5 = vrot.slane %v608_v2, 3 }
  0xf7   : > { %v616_v9 = vrot.slane %v608_v2, 4  ;;  %v614_v10 = vrot.slane %v608_v2, 2  ;;  %v617_v11 = vrot.slane %v608_v2, 5  ;;  %v619_v12 = vrot.slane %v608_v2, 7 }
  0xf8   : > { %v610_v62 = vmul.f32 1.442695, %v609_v32  ;;  %v636_v45 = vsub.f32 %v2148_v31, %v620_v3  ;;  %v621_v13 = vperm.slane %v613_v4, 0  ;;  %v623_v7 = vperm.slane %v615_v5, 0 }
  0xf9   : > { %v624_v19 = vperm.slane %v616_v9, 0  ;;  %v622_v47 = vperm.slane %v614_v10, 0  ;;  %v625_v20 = vperm.slane %v617_v11, 0  ;;  %v627_v21 = vperm.slane %v619_v12, 0 }
  0xfa   : > { %1687 = vpow2.f32 %v610_v62  ;;  %v644_v22 = vmul.f32 1.442695, %v636_v45  ;;  %v637_v23 = vsub.f32 %v2144_v28, %v621_v13  ;;  %v639_v24 = vsub.f32 %v2186_v14, %v623_v7 }
  0xfb   : > { %v640_v25 = vsub.f32 %v2155_v55, %v624_v19  ;;  %v638_v26 = vsub.f32 %v2151_v54, %v622_v47  ;;  %v641_v27 = vsub.f32 %v2164_v41, %v625_v20  ;;  %v643_v31 = vsub.f32 %v2172_v49, %v627_v21 }
  0xfc   : > { %1689 = vpow2.f32 %v644_v22  ;;  %v646_v29 = vmul.f32 1.442695, %v637_v23  ;;  %v650_v15 = vmul.f32 1.442695, %v639_v24  ;;  %v618_v30 = vrot.slane %v608_v2, 6 }
  0xfd   : > { %v652_v18 = vmul.f32 1.442695, %v640_v25  ;;  %v648_v33 = vmul.f32 1.442695, %v638_v26  ;;  %v654_v28 = vmul.f32 1.442695, %v641_v27 }
  0xfe   : > { %1691 = vpow2.f32 %v646_v29  ;;  %v626_v34 = vperm.slane %v618_v30, 0  ;;  %v658_v55 = vmul.f32 1.442695, %v643_v31 }
  0xff   : > { %1693 = vpow2.f32 %v650_v15 }
 0x100   : > { %v2207_v35 = vpop.eup %1687  ;;  %1695 = vpow2.f32 %v652_v18  ;;  %v642_v54 = vsub.f32 %v2169_v44, %v626_v34 }
 0x101   : > { %v1219_v41 = vperm.slane %v2207_v35, 6  ;;  %v1198_v49 = vperm.slane %v2207_v35, 3  ;;  %v1177_v14 = vperm.slane %v2207_v35, 0  ;;  %1697 = vpow2.f32 %v648_v33 }
 0x102   : > { %v2213_v36 = vpop.eup %1689  ;;  %v656_v8 = vmul.f32 1.442695, %v642_v54  ;;  %1699 = vpow2.f32 %v654_v28  ;;  %v1226_v59 = vperm.slane %v2207_v35, 7  ;;  %v1212_v60 = vperm.slane %v2207_v35, 5 }
 0x103   : > { %1224 = vperm.xlu1 %1668, %v1219_v41   ;;  %1203 = vperm.xlu2 %1667, %v1198_v49   ;;  %v662_v38 = vsel %vm253_vm1, %v2213_v36, 0.0  ;;  %1701 = vpow2.f32 %v658_v55 }
 0x104   : > { %v2217_v39 = vpop.eup %1691  ;;  %1182 = vperm.xlu0 %1666, %v1177_v14   ;;  %v663_v44 = vrot.slane %v662_v38, 4  ;;  %1703 = vpow2.f32 %v656_v8 }
 0x105   : > { %v2219_v40 = vpop.eup %1693  ;;  %v669_v42 = vsel %vm253_vm1, %v2217_v39, 0.0 }
 0x106   : > { %v2223_v43 = vpop.eup %1695  ;;  %v664_v46 = vadd.f32 %v663_v44, %v662_v38  ;;  %v670_v48 = vrot.slane %v669_v42, 4  ;;  %v683_v50 = vsel %vm253_vm1, %v2219_v40, 0.0 }
 0x107   : > { %v684_v51 = vrot.slane %v683_v50, 4  ;;  %v690_v52 = vsel %vm253_vm1, %v2223_v43, 0.0  ;;  %v2229_v53 = vpop.eup %1697 }
 0x108   : > { %v665_v37 = vrot.slane %v664_v46, 2  ;;  %v671_v56 = vadd.f32 %v670_v48, %v669_v42  ;;  %v691_v57 = vrot.slane %v690_v52, 4  ;;  %v2231_v58 = vpop.eup %1699  ;;  %v676_v63 = vsel %vm253_vm1, %v2229_v53, 0.0 }
 0x109   : > { %v685_v61 = vadd.f32 %v684_v51, %v683_v50  ;;  %v2237_v0 = vpop.eup %1701  ;;  %v677_v3 = vrot.slane %v676_v63, 4  ;;  %v697_v9 = vsel %vm253_vm1, %v2231_v58, 0.0 }
 0x10a   : > { %v666_v1 = vadd.f32 %v665_v37, %v664_v46  ;;  %v672_v2 = vrot.slane %v671_v56, 2  ;;  %v692_v32 = vadd.f32 %v691_v57, %v690_v52  ;;  %v2239_v4 = vpop.eup %1703  ;;  %v711_v10 = vsel %vm253_vm1, %v2237_v0, 0.0  ;;  %v660_v37 = vld [vmem:[#allocation3] sm:$0xff] }
 0x10b   : > { %1231 = vperm.xlu2 %1667, %v1226_v59   ;;  %v686_v5 = vrot.slane %v685_v61, 2  ;;  %v678_v45 = vadd.f32 %v677_v3, %v676_v63  ;;  %v698_v7 = vrot.slane %v697_v9, 4  ;;  %v712_v19 = vrot.slane %v711_v10, 4 }
 0x10c   : > { %1217 = vperm.xlu0 %1666, %v1212_v60   ;;  %v667_v11 = vrot.slane %v666_v1, 1  ;;  %v673_v12 = vadd.f32 %v672_v2, %v671_v56  ;;  %v693_v62 = vrot.slane %v692_v32, 2  ;;  %v704_v47 = vsel %vm253_vm1, %v2239_v4, 0.0 }
 0x10d   : > { %v687_v13 = vadd.f32 %v686_v5, %v685_v61  ;;  %v679_v22 = vrot.slane %v678_v45, 2  ;;  %v699_v23 = vadd.f32 %v698_v7, %v697_v9  ;;  %v713_v24 = vadd.f32 %v712_v19, %v711_v10 }
 0x10e   : > { %v674_v20 = vrot.slane %v673_v12, 1  ;;  %v694_v21 = vadd.f32 %v693_v62, %v692_v32  ;;  %v705_v25 = vrot.slane %v704_v47, 4  ;;  %v668_v26 = vadd.f32 %v667_v11, %v666_v1 }
 0x10f   : > { %v680_v31 = vadd.f32 %v679_v22, %v678_v45  ;;  %v688_v29 = vrot.slane %v687_v13, 1  ;;  %v700_v15 = vrot.slane %v699_v23, 2  ;;  %v714_v30 = vrot.slane %v713_v24, 2 }
 0x110   : > { %v675_v27 = vadd.f32 %v674_v20, %v673_v12  ;;  %v706_v18 = vadd.f32 %v705_v25, %v704_v47  ;;  %v695_v33 = vrot.slane %v694_v21, 1  ;;  %v661_v61 = vmul.f32 %v2207_v35, %v660_v37  ;;  %v1239_v37 = vld [vmem:[#allocation4 + $0x18] sm:$0xf] }
 0x111   : > { %v681_v34 = vrot.slane %v680_v31, 1  ;;  %v701_v55 = vadd.f32 %v700_v15, %v699_v23  ;;  %v715_v54 = vadd.f32 %v714_v30, %v713_v24  ;;  %v689_v14 = vadd.f32 %v688_v29, %v687_v13  ;;  %v1234_v30 = vld [vmem:[#allocation4 + $0x4] sm:$0xf] }
 0x112   : > { %v726_v28 = vsel %vm593_vm4, %v675_v27, %v668_v26  ;;  %v707_v41 = vrot.slane %v706_v18, 2  ;;  %v696_v44 = vadd.f32 %v695_v33, %v694_v21  ;;  %v1233_v33 = vld [vmem:[#allocation4] sm:$0xf]  ;;  %vm1438_vm4 = vcmask 785408  }
 0x113   : > { %v682_v49 = vadd.f32 %v681_v34, %v680_v31  ;;  %v702_v8 = vrot.slane %v701_v55, 1  ;;  %v716_v46 = vrot.slane %v715_v54, 1 }
 0x114   : > { %v708_v38 = vadd.f32 %v707_v41, %v706_v18 }
 0x115   : > { %v727_v42 = vsel %vm595_vm5, %v682_v49, %v726_v28  ;;  %v703_v50 = vadd.f32 %v702_v8, %v701_v55  ;;  %v717_v59 = vadd.f32 %v716_v46, %v715_v54  ;;  %v1236_v8 = vld [vmem:[#allocation4 + $0xc] sm:$0xf] }
 0x116   : > { %v728_v48 = vsel %vm597_vm6, %v689_v14, %v727_v42  ;;  %v709_v51 = vrot.slane %v708_v38, 1  ;;  %v1235_v14 = vld [vmem:[#allocation4 + $0x8] sm:$0xf] }
 0x117   : > { %v729_v52 = vsel %vm599_vm7, %v696_v44, %v728_v48 }
 0x118   : > { %v730_v56 = vsel %vm601_vm8, %v703_v50, %v729_v52  ;;  %v710_v57 = vadd.f32 %v709_v51, %v708_v38 }
 0x11a   : > { %v731_v60 = vsel %vm603_vm9, %v710_v57, %v730_v56  ;;  %v1237_v56 = vld [vmem:[#allocation4 + $0x10] sm:$0xf] }
 0x11b   : > { %v732_v63 = vsel %vm605_vm10, %v717_v59, %v731_v60 }
 0x11c   : > { %v734_v1 = vadd.f32 %v732_v63, %v661_v61 }
 0x11e   : > { %735 = vst.msk [vmem:[#allocation3] sm:$0xff] %vm253_vm1, %v734_v1 }
 0x12e   : > { %736 = vxpose.xlu0.b32.start.end [1/1] (short) (narrow) %v2213_v36, 8  ;;  %v1270_v36 = vld [vmem:[#allocation3] sm:$0xff] }
 0x12f   : > { %1705 = vrcp.f32 %v1270_v36  ;;  %vm1276_vm12 = vweird.f32 %v1270_v36 }
 0x131   : > { %792 = vxpose.xlu2.b32.start.end [1/1] (short) (narrow) %v2217_v39, 8  ;;  %v1184_v39 = vperm.slane %v2207_v35, 1 }
 0x135   : > { %v1706_v2 = vpop.eup %1705 }
 0x136   : > { %902 = vxpose.xlu0.b32.start.end [1/1] (short) (narrow) %v2219_v40, 8  ;;  %v1272_v32 = vmul.f32 %v1706_v2, %v1270_v36  ;;  %v1191_v40 = vperm.slane %v2207_v35, 2  ;;  %vm1277_vm1 = vweird.f32 %v1706_v2 }
 0x137   : > { %vm1278_vm13 = vmor %vm1276_vm12, %vm1277_vm1 }
 0x138   : > { %957 = vxpose.xlu1.b32.start.end [1/1] (short) (narrow) %v2223_v43, 8  ;;  %v1273_v16 = vsub.f32 1.0, %v1272_v32  ;;  %v1238_v32 = vld [vmem:[#allocation4 + $0x14] sm:$0xf] }
 0x139   : > { %847 = vxpose.xlu2.b32.start.end [1/1] (short) (narrow) %v2229_v53, 8  ;;  %v1282_v53 = vand.u32 2147483648, %v1270_v36 }
 0x13a   : > { %v1274_v43 = vmul.f32 %v1706_v2, %v1273_v16 }
 0x13b   : > { %v1283_v5 = vor.u32 1.1754944e-38, %v1282_v53  ;;  %v1707_v53 = vld [vmem:[#allocation8] sm:$0xf] }
 0x13c   : > { %v1275_v3 = vadd.f32 %v1706_v2, %v1274_v43 }
 0x13e   : > { %1012 = vxpose.xlu0.b32.start.end [1/1] (short) (narrow) %v2231_v58, 8  ;;  %v1205_v58 = vperm.slane %v2207_v35, 4 }
 0x141   : > { %1122 = vxpose.xlu2.b32.start.end [1/1] (short) (narrow) %v2237_v0, 8  ;;  %v1280_v0 = vand.u32 2147483647, %v1270_v36 }
 0x143   : > { %vm1281_vm14 = vcmp.eq.f32.partialorder %v1280_v0, 8.507059e+37  ;;  %v1240_v0 = vld [vmem:[#allocation4 + $0x1c] sm:$0xf] }
 0x149   : > { %1067 = vxpose.xlu2.b32.start.end [1/1] (short) (narrow) %v2239_v4, 8  ;;  %v1279_v4 = vsel %vm1278_vm13, %v1706_v2, %v1275_v3 }
 0x14a   : > { %v1284_v9 = vsel %vm1281_vm14, %v1283_v5, %v1279_v4 }
 0x14b   : > { %v1336_v10 = vperm.slane %v1284_v9, 6  ;;  %v1301_v11 = vperm.slane %v1284_v9, 1  ;;  %v1343_v12 = vperm.slane %v1284_v9, 7  ;;  %v1315_v62 = vperm.slane %v1284_v9, 3 }
 0x14c   : > { %v1322_v45 = vperm.slane %v1284_v9, 4  ;;  %v1329_v35 = vperm.slane %v1284_v9, 5  ;;  %v1308_v7 = vperm.slane %v1284_v9, 2  ;;  %v1294_v47 = vperm.slane %v1284_v9, 0 }
 0x15d   : > { %v1204_v13 = vpop.permute.xlu2 %1203 }
 0x15e   : > { %v1244_v46 = vmul.f32 %v1236_v8, %v1204_v13 }
 0x165   : > { %v2283_v20 = vpop.permute.xlu2 %1231 }
 0x166   : > { %v1248_v13 = vmul.f32 %v1240_v0, %v2283_v20 }
 0x175   : > { %v1225_v25 = vpop.permute.xlu1 %1224 }
 0x176   : > { %v1183_v19 = vpop.permute.xlu0 %1182  ;;  %v1247_v59 = vmul.f32 %v1239_v37, %v1225_v25 }
 0x177   : > { %v1241_v28 = vmul.f32 %v1233_v33, %v1183_v19 }
 0x17e   : > { %v2285_v21 = vpop.permute.xlu0 %1217 }
 0x17f   : > { %v1246_v9 = vmul.f32 %v1238_v32, %v2285_v21 }
 0x192   : > { %1189 = vperm.xlu1 %1668, %v1184_v39  }
 0x19a   : > { %1196 = vperm.xlu1 %1668, %v1191_v40  }
 0x1a2   : > { %1210 = vperm.xlu1 %1668, %v1205_v58  }
 0x1aa   : > { %1341 = vperm.xlu1 %1668, %v1336_v10  }
 0x1ac   : > { %1306 = vperm.xlu0 %1666, %v1301_v11  }
 0x1b2   : > { %1348 = vperm.xlu1 %1668, %v1343_v12   ;;  %1320 = vperm.xlu2 %1667, %v1315_v62   ;;  %v1861_v62 = vmov 1983009808  }
 0x1b4   : > { %1327 = vperm.xlu0 %1666, %v1322_v45   ;;  %v1370_v45 = vunpack.c.l.s4 %v1861_v62 }
 0x1b6   : > { %v1371_v21 = vunpack.c.0.s8 %v1370_v45 }
 0x1ba   : > { %1334 = vperm.xlu1 %1668, %v1329_v35   ;;  %1313 = vperm.xlu2 %1667, %v1308_v7  }
 0x1c2   : > { %1299 = vperm.xlu2 %1667, %v1294_v47  }
 0x1ca   : > { %v808_v22 = vpop.trf.xlu2 }
 0x1cb   : > { %1569 = vmatmul.msk.f32.vlgmr.msrb.gmra.mxu2 %vm768_vm15, %v808_v22 }
 0x1cc   : > { %1172 = vmatpush.msrb.mxu2 %v2028_v17 }
 0x1d2   : > { %v752_v23 = vpop.trf.xlu0  ;;  %v863_v24 = vpop.trf.xlu2 }
 0x1d3   : > { %1568 = vmatmul.msk.f32.vlgmr.msrb.gmra.mxu1 %vm768_vm15, %v752_v23  ;;  %1570 = vmatmul.msk.f32.vlgmr.msrb.gmra.mxu3 %vm768_vm15, %v863_v24 }
 0x1d4   : > { %1117 = vmatpush.msrb.mxu1 %v2014_v6 }
 0x1da   : > { %v918_v26 = vpop.trf.xlu0  ;;  %v1138_v27 = vpop.trf.xlu2 }
 0x1db   : > { %1571 = vmatmul.msk.f32.vlgmr.msra.gmra.mxu1 %vm768_vm15, %v918_v26 }
 0x1dc   : > { %v973_v31 = vpop.trf.xlu1 }
 0x1dd   : > { %1572 = vmatmul.msk.f32.vlgmr.msra.gmra.mxu2 %vm768_vm15, %v973_v31 }
 0x1e2   : > { %v1028_v29 = vpop.trf.xlu0  ;;  %v1083_v15 = vpop.trf.xlu2 }
 0x1e3   : > { %1573 = vmatmul.msk.f32.vlgmr.msra.gmra.mxu3 %vm768_vm15, %v1028_v29  ;;  %1574 = vmatmul.msk.f32.vlgmr.msrb.gmra.mxu1 %vm768_vm15, %v1083_v15 }
 0x1e5   : > { %1575 = vmatmul.msk.f32.vlgmr.msrb.gmra.mxu2 %vm768_vm15, %v1138_v27 }
 0x204   : > { %v1190_v17 = vpop.permute.xlu1 %1189 }
 0x205   : > { %v1242_v6 = vmul.f32 %v1234_v30, %v1190_v17 }
 0x20c   : > { %v1197_v18 = vpop.permute.xlu1 %1196  ;;  %v1321_v54 = vpop.permute.xlu2 %1320 }
 0x20d   : > { %v1243_v44 = vmul.f32 %v1235_v14, %v1197_v18 }
 0x214   : > { %v1211_v38 = vpop.permute.xlu1 %1210  ;;  %v1314_v52 = vpop.permute.xlu2 %1313 }
 0x215   : > { %v1245_v60 = vmul.f32 %v1237_v56, %v1211_v38 }
 0x21c   : > { %v1342_v57 = vpop.permute.xlu1 %1341  ;;  %v1300_v4 = vpop.permute.xlu2 %1299 }
 0x21e   : > { %v1307_v16 = vpop.permute.xlu0 %1306 }
 0x224   : > { %v1349_v47 = vpop.permute.xlu1 %1348 }
 0x226   : > { %v1328_v20 = vpop.permute.xlu0 %1327 }
 0x24e   : > { %v844_v34 = vpop.f32.mrf.mxu2 }
 0x24f   : > { %v1250_v55 = vadd.f32 %v1242_v6, %v844_v34 }
 0x250   : > { %v789_v41 = vpop.f32.mrf.mxu1 }
 0x251   : > { %1259 = vst.msk [vmem:[#allocation4 + $0x4] sm:$0xf] %vm256_vm11, %v1250_v55  ;;  %v1249_v49 = vadd.f32 %v1241_v28, %v789_v41 }
 0x253   : > { %1258 = vst.msk [vmem:[#allocation4] sm:$0xf] %vm256_vm11, %v1249_v49  ;;  %v1335_v49 = vpop.permute.xlu1 %1334 }
 0x256   : > { %v899_v42 = vpop.f32.mrf.mxu3 }
 0x257   : > { %v1251_v48 = vadd.f32 %v1243_v44, %v899_v42 }
 0x258   : > { %v954_v50 = vpop.f32.mrf.mxu1  ;;  %v1287_v5 = vld [vmem:[#allocation4 + $0x4] sm:$0xf] }
 0x259   : > { %1260 = vst.msk [vmem:[#allocation4 + $0x8] sm:$0xf] %vm256_vm11, %v1251_v48  ;;  %v1252_v51 = vadd.f32 %v1244_v46, %v954_v50  ;;  %v1351_v7 = vmul.f32 %v1307_v16, %v1287_v5 }
 0x25a   : > { %v1286_v40 = vld [vmem:[#allocation4] sm:$0xf] }
 0x25b   : > { %1261 = vst.msk [vmem:[#allocation4 + $0xc] sm:$0xf] %vm256_vm11, %v1252_v51  ;;  %v1350_v10 = vmul.f32 %v1300_v4, %v1286_v40  ;;  %v1359_v31 = vsub.f32 %v1351_v7, %v1707_v53 }
 0x25d   : > { %v1358_v24 = vsub.f32 %v1350_v10, %v1707_v53 }
 0x260   : > { %v1009_v61 = vpop.f32.mrf.mxu2  ;;  %v1119_v63 = vpop.f32.mrf.mxu1  ;;  %v1288_v1 = vld [vmem:[#allocation4 + $0x8] sm:$0xf] }
 0x261   : > { %v1253_v36 = vadd.f32 %v1245_v60, %v1009_v61  ;;  %v1255_v2 = vadd.f32 %v1247_v59, %v1119_v63  ;;  %v1352_v39 = vmul.f32 %v1314_v52, %v1288_v1 }
 0x262   : > { %v1289_v43 = vld [vmem:[#allocation4 + $0xc] sm:$0xf] }
 0x263   : > { %1262 = vst.msk [vmem:[#allocation4 + $0x10] sm:$0xf] %vm256_vm11, %v1253_v36  ;;  %v1353_v3 = vmul.f32 %v1321_v54, %v1289_v43  ;;  %v1360_v58 = vsub.f32 %v1352_v39, %v1707_v53  ;;  %v1862_v54 = vmov 1934713408  }
 0x264   : > { %1264 = vst.msk [vmem:[#allocation4 + $0x18] sm:$0xf] %vm256_vm11, %v1255_v2  ;;  %v1396_v41 = vunpack.c.l.s4 %v1862_v54 }
 0x265   : > { %v1361_v11 = vsub.f32 %v1353_v3, %v1707_v53  ;;  %v1366_v19 = vrot.slane %v1360_v58, 4 }
 0x266   : > { %v1064_v12 = vpop.f32.mrf.mxu3  ;;  %v1397_v50 = vunpack.c.0.s8 %v1396_v41 }
 0x267   : > { %v1254_v35 = vadd.f32 %v1246_v9, %v1064_v12  ;;  %v1373_v25 = vrot.slane %v1361_v11, 4  ;;  %v1368_v29 = vsel %vm1367_vm2, %v1366_v19, %v1358_v24 }
 0x268   : > { %v1174_v22 = vpop.f32.mrf.mxu2  ;;  %v1372_v33 = vperm.slane %v1368_v29, %v1371_v21 }
 0x269   : > { %1263 = vst.msk [vmem:[#allocation4 + $0x14] sm:$0xf] %vm256_vm11, %v1254_v35  ;;  %v1256_v23 = vadd.f32 %v1248_v13, %v1174_v22  ;;  %v1374_v30 = vsel %vm1367_vm2, %v1373_v25, %v1359_v31 }
 0x26a   : > { %v1290_v26 = vld [vmem:[#allocation4 + $0x10] sm:$0xf]  ;;  %v1378_v34 = vperm.slane %v1374_v30, %v1371_v21  ;;  %v1393_v8 = vrot.slane %v1372_v33, 4 }
 0x26b   : > { %1265 = vst.msk [vmem:[#allocation4 + $0x1c] sm:$0xf] %vm256_vm11, %v1256_v23  ;;  %v1292_v27 = vld [vmem:[#allocation4 + $0x18] sm:$0xf]  ;;  %v1354_v17 = vmul.f32 %v1328_v20, %v1290_v26 }
 0x26c   : > { %v1356_v15 = vmul.f32 %v1342_v57, %v1292_v27  ;;  %v1391_v46 = vrot.slane %v1378_v34, 4  ;;  %v1394_v52 = vsel %vm1367_vm2, %v1378_v34, %v1393_v8 }
 0x26d   : > { %v1362_v55 = vsub.f32 %v1354_v17, %v1707_v53  ;;  %v1402_v60 = vperm.slane %v1394_v52, %v1397_v50 }
 0x26e   : > { %v1364_v18 = vsub.f32 %v1356_v15, %v1707_v53  ;;  %v1392_v57 = vsel %vm1367_vm2, %v1391_v46, %v1372_v33 }
 0x26f   : > { %v1398_v1 = vperm.slane %v1392_v57, %v1397_v50  ;;  %v1421_v32 = vrot.slane %v1402_v60, 4 }
 0x270   : > { %v1291_v6 = vld [vmem:[#allocation4 + $0x14] sm:$0xf]  ;;  %v1379_v28 = vrot.slane %v1364_v18, 4 }
 0x271   : > { %v1355_v38 = vmul.f32 %v1335_v49, %v1291_v6 }
 0x272   : > { %v1293_v14 = vld [vmem:[#allocation4 + $0x1c] sm:$0xf]  ;;  %v1380_v42 = vsel %vm1367_vm2, %v1379_v28, %v1362_v55 }
 0x273   : > { %v1357_v44 = vmul.f32 %v1349_v47, %v1293_v14  ;;  %v1384_v51 = vperm.slane %v1380_v42, %v1371_v21  ;;  %v1363_v37 = vsub.f32 %v1355_v38, %v1707_v53 }
 0x275   : > { %v1365_v48 = vsub.f32 %v1357_v44, %v1707_v53  ;;  %v1405_v63 = vrot.slane %v1384_v51, 4  ;;  %v1417_v53 = vrot.slane %v1398_v1, 4 }
 0x277   : > { %v1385_v56 = vrot.slane %v1365_v48, 4 }
 0x279   : > { %v1386_v59 = vsel %vm1367_vm2, %v1385_v56, %v1363_v37 }
 0x27a   : > { %v1390_v61 = vperm.slane %v1386_v59, %v1371_v21 }
 0x27c   : > { %v1406_v36 = vsel %vm1367_vm2, %v1390_v61, %v1405_v63  ;;  %v1403_v2 = vrot.slane %v1390_v61, 4 }
 0x27d   : > { %v1414_v39 = vperm.slane %v1406_v36, %v1397_v50 }
 0x27e   : > { %v1404_v16 = vsel %vm1367_vm2, %v1403_v2, %v1384_v51 }
 0x27f   : > { %v1422_v40 = vsel %vm1367_vm2, %v1414_v39, %v1421_v32  ;;  %v1419_v43 = vrot.slane %v1414_v39, 4  ;;  %v1410_v3 = vperm.slane %v1404_v16, %v1397_v50 }
 0x280   : > { %1432 = vrot.lane.b32.xlu1 %v1422_v40, %s1863_s6 }
 0x281   : > { %v1420_v58 = vsel %vm1367_vm2, %v1419_v43, %v1402_v60  ;;  %v1415_v0 = vrot.slane %v1410_v3, 4  ;;  %v1418_v4 = vsel %vm1367_vm2, %v1410_v3, %v1417_v53 }
 0x282   : > { %1428 = vrot.lane.b32.xlu2 %v1420_v58, %s1864_s9  ;;  %1424 = vrot.lane.b32.xlu0 %v1418_v4, %s1865_s11 }
 0x283   : > { %v1416_v5 = vsel %vm1367_vm2, %v1415_v0, %v1398_v1 }
 0x2dc   : > { %v1429_v10 = vpop.permute.xlu2 %1428 }
 0x2f2   : > { %v1433_v12 = vpop.permute.xlu1 %1432 }
 0x2f4   : > { %v1425_v9 = vpop.permute.xlu0 %1424 }
 0x2f5   : > { %v1435_v11 = vsel %vm276_vm0, %v1416_v5, %v1425_v9 }
 0x2f6   : > { %v1437_v62 = vsel %vm1436_vm3, %v1435_v11, %v1429_v10 }
 0x2f7   : > { %v1439_v45 = vsel %vm1438_vm4, %v1437_v62, %v1433_v12 }
 0x2f8   : > { %1440 = vst [vmem:[%s247_s5] sm:$0xff] %v1439_v45 }
 0x2f9   : > { %1795 = shalt.err (!%p1792_p1)
}
 0x2fa   : > { %1590 = dma.vmem_to_hbm [thread:$0]  (%p1943_p8), %s1455_s8, 128, %s1457_s12, %s1442_s18  }
 0x2fb PF: > { %s2376_s13 = sld [smem:[#allocation14_spill]]  ;;  %s1468_s9 = sand.u32 1, %s1834_s15  }
 0x2fc   : > { %p1601_p2 = pnand %p1551_p13, %p1947_p9  ;;  %s1469_s11 = scalar_lea.sflag [#allocation7], %s1468_s9 }
 0x2fe   : > { %p1602_p4 = pneg %p1601_p2 }
 0x300   : > { %1829 = dma.done.wait (%p1602_p4), %s1469_s11, 128  }
 0x301   : > { %1831 = vsyncadd (%p1602_p4), %s1469_s11, 4294967168  ;;  %s21_s20 = sadd.s32 1, %s2376_s13   ;;  %s2377_s15 = smov %s1838_s16 }
 0x302   : > { %p18_p6 = scmp.ge.s32.totalorder %s21_s20, 4   ;;  %s2378_s16 = smov %s1842_s17 }
 0x303   : > { %s2379_s17 = smov %s1985_s7  ;;  %s2380_s18 = smov %s1850_s19 }
 0x304   : > { %s2381_s19 = smov %s2383_s10  ;;  %20 = sbr.rel (!%p18_p6) target bundleno = 9 (0x9), region = 93 }
 0x309   :  { %1475 = vsyncpa [#allocation6], 1 }
 0x30a   :  { %1477 = vsyncpa [#allocation6 + $0x1], 1 }
 0x30b   :  { %1478 = vsyncpa [#allocation9], 1 }
 0x30c   :  { %1479 = vsyncpa [#allocation7], 1 }
 0x30d   :  { %1481 = vsyncpa [#allocation7 + $0x1], 1 }

</bundles_post_ra>
